<compile_context>
chip_gen: v7x
topology: tpu7x:2x2x1
jax: 0.10.0
libtpu: 0.0.40
codegen_flags: <defaults>
</compile_context>

<pallas_src>
import jax
import jax.numpy as jnp
from jax import lax
from jax.experimental import pallas as pl
from jax.experimental.pallas import tpu as pltpu

EPS = 1e-5


def _round_up(x, m):
    return ((x + m - 1) // m) * m


def _vmem_budget_bytes():
    """Usable VMEM budget, leaving headroom for compiler-internal scratch."""
    try:
        cap = int(pltpu.get_tpu_info().vmem_capacity_bytes)
    except Exception:
        cap = 64 << 20  # conservative fallback: v7x has the smallest VMEM (64 MiB/TC)
    # v7x (64 MiB)  -> 48 MiB budget; v5e/v6e (128 MiB) -> 112 MiB budget.
    return int(min(cap - (16 << 20), 112 << 20))


def _num_tensorcores():
    """Best-effort TensorCore count (2 on v7x, 1 on v5e/v6e); defaults to 1."""
    try:
        info = pltpu.get_tpu_info()
        for name in ("num_cores", "core_count", "tensorcore_count", "num_tensorcores"):
            v = getattr(info, name, None)
            if v:
                return int(v)
    except Exception:
        pass
    return 1


# ---------------------------------------------------------------------------
# Kernel: each grid step owns the FULL batch and a lane-dense slab of output
# features, so the matmul, lambda-scale, ReLU and the per-feature batch-norm
# reduction (over the batch axis only) are one carry-free pass per step.
# ---------------------------------------------------------------------------
def ranpac_kernel(lam_ref, x_ref, w_ref, gb_ref, o_ref):
    # lam_ref: SMEM (1, 1)      f32  scalar lambda
    # x_ref:   VMEM (B, D_in)   bf16 (resident: constant index_map)
    # w_ref:   VMEM (D_in, TN)  bf16 (pre-transposed weight slab)
    # gb_ref:  VMEM (2, TN)     f32  (row 0 = gamma, row 1 = beta)
    # o_ref:   VMEM (B, TN)     output dtype
    lam = lam_ref[0, 0]

    # Natural (M,K)x(K,N) contraction on the MXU, f32 accumulation.
    y = jnp.dot(x_ref[...], w_ref[...], preferred_element_type=jnp.float32)

    # lambda scale + ReLU (VPU, f32).
    y = jnp.maximum(y * lam, 0.0)

    # BatchNorm1d training mode: per-feature batch stats, biased variance,
    # single-pass (E[y^2] - mean^2), folded into one per-feature scale+shift.
    mean = jnp.mean(y, axis=0, keepdims=True)            # (1, TN)
    mean_sq = jnp.mean(y * y, axis=0, keepdims=True)     # (1, TN)
    var = jnp.maximum(mean_sq - mean * mean, 0.0)
    inv_std = lax.rsqrt(var + EPS)

    s = inv_std * gb_ref[0:1, :]                          # (1, TN)
    b = gb_ref[1:2, :] - mean * s                         # (1, TN)
    o_ref[...] = (y * s + b).astype(o_ref.dtype)


def build_ranpac_forward(w, lam, gamma, beta, *, batch_size, out_dtype=jnp.float32):
    """One-time setup for the RanPAC forward pass.

    w:            [D_out, D_in] frozen projection weight (PyTorch Linear layout).
    lam:          scalar lambda.
    gamma, beta:  [D_out] BatchNorm affine parameters.
    batch_size:   batch dimension B the returned callable will be used with.

    Returns forward(x) mapping [B, D_in] -> [B, D_out] (dtype = out_dtype).
    All weight preprocessing (padding, transpose, bf16 cast) happens here once.
    """
    D_out, D_in = w.shape
    B = int(batch_size)
    out_itemsize = jnp.dtype(out_dtype).itemsize

    # --- chip-aware feature-tile selection ------------------------------------
    budget = _vmem_budget_bytes()
    n128 = _round_up(D_out, 128) // 128

    fixed = 2 * B * D_in * 2                    # resident x (bf16, double-buffered)
    per_col = (2 * D_in * 2                     # W slab column (bf16, double-buffered)
               + 2 * 2 * 4                      # gamma/beta slab column
               + 2 * B * out_itemsize           # output slab column
               + 2 * B * 4)                     # f32 y intermediate / temps
    t_cap = max(1, min(n128, (budget - fixed) // (128 * per_col)))

    # Prefer a tile that divides the 128-padded D_out (no extra padding and no
    # trailing output slice-copy), unless that would >2x the grid-step count.
    t_div = 1
    for t in range(t_cap, 0, -1):
        if n128 % t == 0:
            t_div = t
            break
    t = t_div if 2 * t_div >= t_cap else t_cap

    # Only on multi-TensorCore parts (v7x): avoid a single-step grid when an
    # even split exists, so both cores get work under "parallel".
    if _num_tensorcores() >= 2 and t == n128 and n128 % 2 == 0:
        t = n128 // 2

    tn = 128 * t
    D_out_pad = _round_up(_round_up(D_out, 128), tn)
    grid = (D_out_pad // tn,)

    footprint = fixed + tn * per_col
    vmem_limit = int(min(budget, max(32 << 20, 2 * footprint)))

    # --- one-time parameter preparation (frozen projection) -------------------
    pad = D_out_pad - D_out
    w_p = jnp.pad(w, ((0, pad), (0, 0))) if pad else w
    w_t = jnp.asarray(w_p.T, dtype=jnp.bfloat16)              # (D_in, D_out_pad)
    gamma_p = jnp.pad(gamma, (0, pad)) if pad else gamma
    beta_p = jnp.pad(beta, (0, pad)) if pad else beta
    gb = jnp.stack([gamma_p, beta_p]).astype(jnp.float32)     # (2, D_out_pad)
    lam_arr = jnp.reshape(jnp.asarray(lam, jnp.float32), (1, 1))
    w_t, gb, lam_arr = jax.block_until_ready((w_t, gb, lam_arr))

    call = pl.pallas_call(
        ranpac_kernel,
        out_shape=jax.ShapeDtypeStruct((B, D_out_pad), out_dtype),
        grid_spec=pltpu.PrefetchScalarGridSpec(
            num_scalar_prefetch=0,
            grid=grid,
            in_specs=[
                pl.BlockSpec(memory_space=pltpu.MemorySpace.SMEM),   # lambda scalar
                pl.BlockSpec((B, D_in), lambda j: (0, 0)),           # x (full batch, resident)
                pl.BlockSpec((D_in, tn), lambda j: (0, j)),          # pre-transposed W slab
                pl.BlockSpec((2, tn), lambda j: (0, j)),             # packed gamma/beta slab
            ],
            out_specs=pl.BlockSpec((B, tn), lambda j: (0, j)),
        ),
        compiler_params=pltpu.CompilerParams(
            dimension_semantics=("parallel",),
            vmem_limit_bytes=vmem_limit,
        ),
    )

    @jax.jit
    def forward(x):
        out = call(lam_arr, x.astype(jnp.bfloat16), w_t, gb)
        return out[:, :D_out] if D_out_pad != D_out else out

    return forward


def ranpac_reference(x, w, lam, gamma, beta):
    y = x @ w.T * lam
    y = jnp.maximum(y, 0.0)
    mean = jnp.mean(y, axis=0, keepdims=True)
    var = jnp.mean((y - mean) ** 2, axis=0, keepdims=True)
    return (y - mean) / jnp.sqrt(var + EPS) * gamma[None, :] + beta[None, :]


if __name__ == "__main__":
    # Small, module-consistent shapes: batch=8, input_dim=32, output_dim=256.
    B, D_in, D_out = 8, 32, 256

    key = jax.random.PRNGKey(0)
    kx, kw = jax.random.split(key)

    x = jax.random.normal(kx, (B, D_in), dtype=jnp.float32)
    # nn.init.normal_(weight, mean=0, std=1.0), shape [output_dim, input_dim]
    w = jax.random.normal(kw, (D_out, D_in), dtype=jnp.float32)
    # lambda_value=None -> nn.Parameter([0.001])
    lam = jnp.float32(0.001)
    # BatchNorm1d affine params at init: weight=1, bias=0
    gamma = jnp.ones((D_out,), dtype=jnp.float32)
    beta = jnp.zeros((D_out,), dtype=jnp.float32)

    # One-time build: all weight preprocessing happens here, not per forward.
    forward = build_ranpac_forward(w, lam, gamma, beta, batch_size=B)

    out = jax.block_until_ready(forward(x))

    # Reference computed with the same bf16-rounded MXU operands (f32 math),
    # matching the kernel's intended precision (deliberate deviation from the
    # fp32 PyTorch Linear, accumulation stays f32).
    x_q = x.astype(jnp.bfloat16).astype(jnp.float32)
    w_q = w.astype(jnp.bfloat16).astype(jnp.float32)
    ref = ranpac_reference(x_q, w_q, lam, gamma, beta)

    assert out.shape == (B, D_out)
    assert jnp.allclose(out, ref, atol=2e-3, rtol=2e-3), "mismatch vs reference"

    print("KERNEL_OK")
</pallas_src>

<mosaic_0001>
module attributes {stable_mosaic.version = 11 : i64} {
  func.func @ranpac_kernel(%arg0: i32, %arg1: memref<1x1xf32, #tpu.memory_space<smem>>, %arg2: memref<8x32xbf16, #tpu.memory_space<vmem>>, %arg3: memref<32x256xbf16, #tpu.memory_space<vmem>>, %arg4: memref<2x256xf32, #tpu.memory_space<vmem>>, %arg5: memref<8x256xf32, #tpu.memory_space<vmem>>) attributes {dimension_semantics = [#tpu.dimension_semantics<parallel>], iteration_bounds = array<i64: 1>, scalar_prefetch = 0 : i64, scratch_operands = 0 : i64, tpu.core_type = #tpu.core_type<tc>, window_params = [{transform_indices = @transform_0, window_bounds = array<i64: 1, 1>}, {pipeline_mode = #tpu.pipeline_mode<synchronous>, transform_indices = @transform_1, window_bounds = array<i64: 8, 32>}, {transform_indices = @transform_2, window_bounds = array<i64: 32, 256>}, {transform_indices = @transform_3, window_bounds = array<i64: 2, 256>}, {transform_indices = @transform_4, window_bounds = array<i64: 8, 256>}]} {
    %c0 = arith.constant 0 : index
    %c0_0 = arith.constant 0 : index
    %0 = memref.load %arg1[%c0, %c0_0] : memref<1x1xf32, #tpu.memory_space<smem>>
    %c0_1 = arith.constant 0 : index
    %c0_2 = arith.constant 0 : index
    %1 = vector.load %arg2[%c0_1, %c0_2] : memref<8x32xbf16, #tpu.memory_space<vmem>>, vector<8x32xbf16>
    %c0_3 = arith.constant 0 : index
    %c0_4 = arith.constant 0 : index
    %2 = vector.load %arg3[%c0_3, %c0_4] : memref<32x256xbf16, #tpu.memory_space<vmem>>, vector<32x256xbf16>
    %cst = arith.constant dense<0.000000e+00> : vector<8x256xf32>
    %3 = tpu.matmul %1, %2, %cst {dimension_numbers = #tpu.dot_dimension_numbers<[1], [0], [0], [1], [0, 0, 1, 1], [], []>} : vector<8x32xbf16>, vector<32x256xbf16>, vector<8x256xf32> -> vector<8x256xf32>
    %4 = vector.broadcast %0 : f32 to vector<8x256xf32>
    %5 = arith.mulf %3, %4 : vector<8x256xf32>
    %cst_5 = arith.constant 0.000000e+00 : f32
    %6 = vector.broadcast %cst_5 : f32 to vector<8x256xf32>
    %7 = arith.maximumf %5, %6 : vector<8x256xf32>
    %cst_6 = arith.constant dense<0.000000e+00> : vector<256xf32>
    %8 = vector.multi_reduction <add>, %7, %cst_6 [0] : vector<8x256xf32> to vector<256xf32>
    %9 = vector.shape_cast %8 : vector<256xf32> to vector<1x256xf32>
    %cst_7 = arith.constant 8.000000e+00 : f32
    %10 = vector.broadcast %cst_7 : f32 to vector<1x256xf32>
    %11 = arith.divf %9, %10 : vector<1x256xf32>
    %12 = arith.mulf %7, %7 : vector<8x256xf32>
    %cst_8 = arith.constant dense<0.000000e+00> : vector<256xf32>
    %13 = vector.multi_reduction <add>, %12, %cst_8 [0] : vector<8x256xf32> to vector<256xf32>
    %14 = vector.shape_cast %13 : vector<256xf32> to vector<1x256xf32>
    %cst_9 = arith.constant 8.000000e+00 : f32
    %15 = vector.broadcast %cst_9 : f32 to vector<1x256xf32>
    %16 = arith.divf %14, %15 : vector<1x256xf32>
    %17 = arith.mulf %11, %11 : vector<1x256xf32>
    %18 = arith.subf %16, %17 : vector<1x256xf32>
    %cst_10 = arith.constant 0.000000e+00 : f32
    %19 = vector.broadcast %cst_10 : f32 to vector<1x256xf32>
    %20 = arith.maximumf %18, %19 : vector<1x256xf32>
    %cst_11 = arith.constant 9.99999974E-6 : f32
    %21 = vector.broadcast %cst_11 : f32 to vector<1x256xf32>
    %22 = arith.addf %20, %21 : vector<1x256xf32>
    %23 = math.rsqrt %22 : vector<1x256xf32>
    %c0_12 = arith.constant 0 : index
    %c0_13 = arith.constant 0 : index
    %24 = vector.load %arg4[%c0_12, %c0_13] : memref<2x256xf32, #tpu.memory_space<vmem>>, vector<1x256xf32>
    %25 = arith.mulf %23, %24 : vector<1x256xf32>
    %c1 = arith.constant 1 : index
    %c0_14 = arith.constant 0 : index
    %26 = vector.load %arg4[%c1, %c0_14] : memref<2x256xf32, #tpu.memory_space<vmem>>, vector<1x256xf32>
    %27 = arith.mulf %11, %25 : vector<1x256xf32>
    %28 = arith.subf %26, %27 : vector<1x256xf32>
    %29 = vector.broadcast %25 : vector<1x256xf32> to vector<8x256xf32>
    %30 = arith.mulf %7, %29 : vector<8x256xf32>
    %31 = vector.broadcast %28 : vector<1x256xf32> to vector<8x256xf32>
    %32 = arith.addf %30, %31 : vector<8x256xf32>
    %c0_15 = arith.constant 0 : index
    %c0_16 = arith.constant 0 : index
    %33 = vector.load %arg5[%c0_15, %c0_16] : memref<8x256xf32, #tpu.memory_space<vmem>>, vector<8x256xf32>
    tpu.vector_store %arg5[%c0_15, %c0_16], %32 {strides = array<i32>} : memref<8x256xf32, #tpu.memory_space<vmem>>, vector<8x256xf32>,
    return
  }
  func.func @transform_0(%arg0: i32) -> (i32, i32) {
    %c0_i32 = arith.constant 0 : i32
    %c0_i32_0 = arith.constant 0 : i32
    %c0_i32_1 = arith.constant 0 : i32
    return %c0_i32, %c0_i32_0 : i32, i32
  }
  func.func @transform_1(%arg0: i32) -> (i32, i32) {
    %c0_i32 = arith.constant 0 : i32
    %c0_i32_0 = arith.constant 0 : i32
    %c0_i32_1 = arith.constant 0 : i32
    return %c0_i32, %c0_i32_0 : i32, i32
  }
  func.func @transform_2(%arg0: i32) -> (i32, i32) {
    %c0_i32 = arith.constant 0 : i32
    %c0_i32_0 = arith.constant 0 : i32
    return %c0_i32, %arg0 : i32, i32
  }
  func.func @transform_3(%arg0: i32) -> (i32, i32) {
    %c0_i32 = arith.constant 0 : i32
    %c0_i32_0 = arith.constant 0 : i32
    return %c0_i32, %arg0 : i32, i32
  }
  func.func @transform_4(%arg0: i32) -> (i32, i32) {
    %c0_i32 = arith.constant 0 : i32
    %c0_i32_0 = arith.constant 0 : i32
    return %c0_i32, %arg0 : i32, i32
  }
}

</mosaic_0001>

<bundles_post_ra>
// kernel: forward.1
= control target key start
LH: loop header
LB: loop body
LE: loop exit
PB: predicated region body
PF: predicated region fallthrough
CT: control target
= control target key end

     0   :  { %v256_v2 = vmov 0   ;;  %s334_s0 = inlined_call_operand.<no memory space> [shape: f32[1,1], index: 0, kind: input, shape index: {}]   ;;  %s335_s1 = inlined_call_operand.vmem [shape: bf16[8,32], index: 1, kind: input, shape index: {}]   ;;  %s336_s2 = inlined_call_operand.vmem [shape: bf16[32,256], index: 2, kind: input, shape index: {}]   ;;  %s337_s3 = inlined_call_operand.vmem [shape: f32[2,256], index: 3, kind: input, shape index: {}]   ;;  %s338_s4 = inlined_call_operand.hbm [shape: f32[8,256], index: 4, kind: output, shape index: {}]  }
   0x1   :  { %v222_v0 = vld [vmem:[%s336_s2 + $0x4] ss:$8 sps:$4 sm:$0xff]   ;;  %v224_v1 = vld [vmem:[%s336_s2] ss:$8 sps:$4 sm:$0xff]   ;;  %82 = vmatprep.mubr.bf16.mxu0 %v256_v2  ;;  %v225_v3 = vld [vmem:[%s336_s2 + $0x14] ss:$8 sps:$4 sm:$0xff]  }
   0x2   :  { %50 = vmatprep.subr.bf16.mxu0 %v222_v0  ;;  %v227_v4 = vld [vmem:[%s336_s2 + $0x10] ss:$8 sps:$4 sm:$0xff]  }
   0x3   :  { %51 = vmatpush1.bf16.msra.mxu0 %v224_v1 }
   0x4   :  { %10 = vsyncpa [#allocation4], 0  ;;  %52 = vmatprep.subr.bf16.mxu0 %v225_v3  ;;  %v21_v5 = vld [vmem:[%s335_s1] sm:$0xf]  ;;  %vm46_vm0 = vcmask 261120   ;;  %v91_v6 = vstv %s334_s0  ;;  %v139_v49 = vlaneseq  ;;  %s258_s28 = smov [#allocation3]  }
   0x5   :  { %v137_v56 = vld [vmem:[%s337_s3] ss:$2 sm:$0x3]  ;;  %v257_v58 = vmov 1966171168   ;;  %s205_s29 = sshll.u32 %s258_s28, 4  ;;  %s206_s29 = int_to_ptr.vmem [resolvable:$true] %s205_s29 }
   0x6   :  { %v140_v54 = vshrl.u32 %v139_v49, 7  ;;  %v159_v59 = vunpack.c.l.s4 %v257_v58  ;;  %s232_s30 = scalar_lea.vmem %s206_s29, 256  ;;  %p237_p1 = scmp.lt.s32.totalorder %s206_s29, %s206_s29 }
   0x7   :  { %53 = vmatpush1.bf16.msra.mxu0 %v227_v4  ;;  %p233_p0 = scmp.ne.s32.totalorder %s206_s29, %s232_s30  ;;  %p238_p2 = scmp.lt.s32.totalorder %s232_s30, %s232_s30 }
   0x8   :  { %v141_v55 = vsub.s32 0, %v140_v54  ;;  %v145_v57 = vsub.s32 1, %v140_v54  ;;  %v160_v63 = vunpack.c.0.s8 %v159_v59 }
   0x9   :  { %p239_p3 = por %p238_p2, %p237_p1 }
   0xa   :  { %217 = vmatmul.mubr.msk.bf16.vlgmr.msra.gmra.mrb[0].mxu0 %vm46_vm0, %v21_v5  ;;  %v142_v60 = vrot.slane %v137_v56, %v141_v55  ;;  %v146_v61 = vrot.slane %v137_v56, %v145_v57  ;;  %v163_v5 = vsub.s32 %v160_v63, %v140_v54 }
   0xb   :  { %p240_p4 = pnand %p239_p3, %p233_p0 }
  0xdd   :  { %v84_v7 = vpop.f32.mrb[0].mxu0 }
  0xde   :  { %v92_v8 = vmul.f32 %v91_v6, %v84_v7  ;;  %v86_v9 = vpop.f32.mrb[1].mxu0 }
  0xdf   :  { %v93_v10 = vmul.f32 %v91_v6, %v86_v9  ;;  %v88_v11 = vpop.f32.mrb[2].mxu0 }
  0xe0   :  { %v302_v12 = vmax.f32 %v92_v8, 0.0  ;;  %v89_v13 = vpop.f32.mrb[3].mxu0  ;;  %v218_v8 = vld [vmem:[%s337_s3 + $0x1] ss:$2 sm:$0x3] }
  0xe1   :  { %v304_v14 = vmax.f32 %v93_v10, 0.0 }
  0xe2   :  { %v96_v15 = vrot.slane %v302_v12, 4  ;;  %v111_v16 = vmul.f32 %v302_v12, %v302_v12 }
  0xe3   :  { %v102_v17 = vrot.slane %v304_v14, 4  ;;  %v112_v18 = vmul.f32 %v304_v14, %v304_v14 }
  0xe4   :  { %v97_v19 = vadd.f32 %v96_v15, %v302_v12  ;;  %v113_v20 = vrot.slane %v111_v16, 4 }
  0xe5   :  { %v103_v21 = vadd.f32 %v102_v17, %v304_v14  ;;  %v119_v22 = vrot.slane %v112_v18, 4 }
  0xe6   :  { %v98_v23 = vrot.slane %v97_v19, 2  ;;  %v114_v24 = vadd.f32 %v113_v20, %v111_v16 }
  0xe7   :  { %v104_v25 = vrot.slane %v103_v21, 2  ;;  %v120_v26 = vadd.f32 %v119_v22, %v112_v18 }
  0xe8   :  { %v99_v27 = vadd.f32 %v98_v23, %v97_v19  ;;  %v115_v28 = vrot.slane %v114_v24, 2 }
  0xe9   :  { %v105_v29 = vadd.f32 %v104_v25, %v103_v21  ;;  %v121_v30 = vrot.slane %v120_v26, 2 }
  0xea   :  { %v100_v31 = vrot.slane %v99_v27, 1  ;;  %v116_v32 = vadd.f32 %v115_v28, %v114_v24 }
  0xeb   :  { %v106_v33 = vrot.slane %v105_v29, 1  ;;  %v122_v34 = vadd.f32 %v121_v30, %v120_v26 }
  0xec   :  { %v101_v35 = vadd.f32 %v100_v31, %v99_v27  ;;  %v117_v36 = vrot.slane %v116_v32, 1 }
  0xed   :  { %v107_v37 = vadd.f32 %v106_v33, %v105_v29  ;;  %v123_v38 = vrot.slane %v122_v34, 1 }
  0xee   :  { %v109_v39 = vmul.f32 0.125, %v101_v35  ;;  %v118_v40 = vadd.f32 %v117_v36, %v116_v32 }
  0xef   :  { %v110_v41 = vmul.f32 0.125, %v107_v37  ;;  %v124_v42 = vadd.f32 %v123_v38, %v122_v34 }
  0xf0   :  { %v125_v43 = vmul.f32 0.125, %v118_v40  ;;  %v127_v44 = vmul.f32 %v109_v39, %v109_v39 }
  0xf1   :  { %v126_v45 = vmul.f32 0.125, %v124_v42  ;;  %v128_v46 = vmul.f32 %v110_v41, %v110_v41 }
  0xf2   :  { %v129_v47 = vsub.f32 %v125_v43, %v127_v44 }
  0xf3   :  { %v130_v48 = vsub.f32 %v126_v45, %v128_v46 }
  0xf4   :  { %v131_v50 = vmax.f32 %v129_v47, 0.0 }
  0xf5   :  { %v132_v51 = vmax.f32 %v130_v48, 0.0 }
  0xf6   :  { %v133_v52 = vadd.f32 1e-05, %v131_v50 }
  0xf7   :  { %v134_v53 = vadd.f32 1e-05, %v132_v51 }
  0xf8   :  { %228 = vrsqrt.f32 %v133_v52 }
  0xf9   :  { %230 = vrsqrt.f32 %v134_v53 }
 0x102   :  { %v229_v62 = vpop.eup %228 }
 0x103   :  { %v231_v0 = vpop.eup %230  ;;  %v149_v1 = vmul.f32 %v229_v62, %v142_v60 }
 0x104   :  { %v150_v2 = vmul.f32 %v231_v0, %v146_v61 }
 0x105   :  { %v153_v3 = vmul.f32 %v149_v1, %v109_v39  ;;  %v177_v10 = vrot.slane %v149_v1, %v141_v55 }
 0x106   :  { %v154_v4 = vmul.f32 %v150_v2, %v110_v41  ;;  %v181_v11 = vrot.slane %v150_v2, %v141_v55 }
 0x107   :  { %v182_v15 = vmul.f32 %v177_v10, %v302_v12 }
 0x108   :  { %v157_v6 = vcombine.low %v153_v3, %v154_v4  ;;  %v183_v16 = vmul.f32 %v181_v11, %v304_v14 }
 0x10a   :  { %v164_v7 = vrot.slane %v157_v6, %v163_v5 }
 0x10c   :  { %v171_v9 = vrot.slane %v164_v7, %v163_v5 }
 0x10e   :  { %v173_v13 = vsub.f32 %v218_v8, %v171_v9 }
 0x110   :  { %v188_v17 = vrot.slane %v173_v13, %v141_v55  ;;  %v192_v18 = vrot.slane %v173_v13, %v145_v57 }
 0x112   :  { %v195_v19 = vadd.f32 %v188_v17, %v182_v15  ;;  %v196_v20 = vadd.f32 %v192_v18, %v183_v16 }
 0x114   :  { %197 = vst [vmem:[#allocation3] sm:$0xff] %v195_v19  ;;  %198 = vst [vmem:[#allocation3 + $0x8] sm:$0xff] %v196_v20 }
 0x115   :  { %243 = shalt.err (!%p240_p4)
}
 0x116   :  { %s244_s6 = scalar_lea.hbm %s338_s4, 256 }
 0x117   :  { %p245_p5 = scmp.ne.s32.totalorder %s338_s4, %s244_s6  ;;  %p248_p6 = scmp.lt.u32.totalorder %s244_s6, %s338_s4 }
 0x119   :  { %p250_p7 = pnand %p248_p6, %p245_p5 }
 0x11b   :  { %253 = shalt.err (!%p250_p7)
}
 0x11c   :  { %208 = dma.vmem_to_hbm [thread:$0]  %s206_s29, 256, %s338_s4, [#allocation4]  }
 0x11d   :  { %254 = dma.done.wait [#allocation4], 256  }
 0x11e   :  { %255 = vsyncadd [#allocation4], 4294967040 }
 0x11f   :  { %212 = vsyncpa [#allocation4], 1 }

</bundles_post_ra>
